<compile_context>
chip_gen: v6e
topology: v6e:2x2x1
jax: 0.10.0
libtpu: 0.0.40
codegen_flags: <defaults>
</compile_context>

<pallas_src>
import functools

import jax
import jax.numpy as jnp
from jax.experimental import pallas as pl
from jax.experimental.pallas import tpu as pltpu


def conv_regressor_kernel(x_ref, a_ref, wemb_ref, bemb_ref, wl_ref, bl_ref,
                          wfc_ref, bfc_ref, o_ref, *, n_nodes, compute_dtype):
    rows, _ = x_ref.shape                 # rows = Bt * N
    cp = wemb_ref.shape[1]                # lane-padded channel count
    n_layers = wl_ref.shape[0]
    bt = rows // n_nodes

    a_blk = a_ref[...]                    # (rows, rows) block-diagonal, bf16

    # embedding: one tall (rows, 16) @ (16, Cp) MXU matmul, f32 accumulation.
    h = jnp.dot(x_ref[...], wemb_ref[...], preferred_element_type=jnp.float32)
    h = h.astype(compute_dtype) + bemb_ref[...]            # (rows, Cp)

    # GCN layers, fully unrolled (n_layers is static) with static indexing
    # into the stacked (L, Cp, Cp) weights.  Both matmuls per layer are dense
    # full-MXU dots; no per-layer reshapes / relayouts.
    for l in range(n_layers):
        hw = jnp.dot(h.astype(jnp.bfloat16), wl_ref[l],
                     preferred_element_type=jnp.float32)   # (rows, Cp), f32
        hw = (hw.astype(compute_dtype) + bl_ref[l]).astype(jnp.bfloat16)
        ah = jnp.dot(a_blk, hw, preferred_element_type=jnp.float32)  # block-diag A @ h
        h = jnp.maximum(ah, 0.0).astype(compute_dtype)     # ReLU

    # node mean: f32 sublane (XLU) reduce (exact 1/N in f32), fused fc+sigmoid.
    m = jnp.sum(h.reshape(bt, n_nodes, cp).astype(jnp.float32), axis=1)
    m = m * (1.0 / n_nodes)                                 # (Bt, Cp)
    # fc + sigmoid stay fused so one kernel covers the whole forward; a bf16
    # o_ref (or hoisting fc to XLA) would further shrink the per-step writeback.
    out = jnp.dot(m.astype(jnp.bfloat16), wfc_ref[...],
                  preferred_element_type=jnp.float32)
    out = out + bfc_ref[...]                                # (Bt, 1024)
    o_ref[...] = jax.nn.sigmoid(out)


def _choose_block_batch(B, N, target_rows=512):
    """Graphs per grid step: largest Bt with Bt*N <= target_rows (fills the MXU
    M-dim, amortizes per-step overhead), preferring >=2 (and even) grid steps
    so the "parallel" axis balances across v7x's two TensorCores.  Bt keeps the
    (Bt, OUT) output block sublane-legal (Bt % 8 == 0 or Bt == B)."""
    valid = [d for d in range(1, B + 1)
             if B % d == 0 and (d == B or d % 8 == 0)]
    multi = [d for d in valid if B // d >= 2] or valid
    within = [d for d in multi if d * N <= target_rows] or [min(multi)]
    even = [d for d in within if (B // d) % 2 == 0]
    return max(even) if even else max(within)


def _pad_to(a, shape):
    pads = [(0, s - d) for d, s in zip(a.shape, shape)]
    return jnp.pad(a, pads) if any(p[1] for p in pads) else a


def conv_regressor_forward(x, A, params, *, target_rows=512):
    B, N, F_in = x.shape
    C = params["wemb"].shape[1]
    L = params["wl"].shape[0]
    OUT = params["wfc"].shape[1]

    # Lane-dense channel padding: padded channels carry exact zeros through
    # every layer and are ignored by the zero-padded fc rows.
    Cp = ((C + 127) // 128) * 128

    # bf16 VALU exists on v6e / v7x; keep elementwise math f32 on older chips.
    kind = jax.devices()[0].device_kind.lower()
    compute_dtype = (jnp.bfloat16
                     if any(t in kind for t in ("v6", "v7", "7x"))
                     else jnp.float32)

    wemb = _pad_to(params["wemb"], (F_in, Cp)).astype(jnp.bfloat16)
    bemb = _pad_to(params["bemb"], (1, Cp)).astype(compute_dtype)
    wl = _pad_to(params["wl"], (L, Cp, Cp)).astype(jnp.bfloat16)
    bl = _pad_to(params["bl"], (L, 1, Cp)).astype(compute_dtype)
    wfc = _pad_to(params["wfc"], (Cp, OUT)).astype(jnp.bfloat16)
    bfc = params["bfc"].astype(jnp.float32)

    Bt = _choose_block_batch(B, N, target_rows)
    n_steps = B // Bt
    rows = Bt * N

    # Flatten the node axis into the row axis so each step DMAs one dense
    # (rows, 16) slab; bf16 operands halve DMA bytes.
    x2 = x.reshape(B * N, F_in).astype(jnp.bfloat16)

    # Block-diagonal adjacency per grid step: A_blk[s] carries graph g on its
    # g-th (N, N) diagonal block, so A_blk @ h == per-graph A @ h as one dense
    # (rows, rows) @ (rows, Cp) MXU matmul per layer.
    # TODO(synk): for large N*Bt build this in-kernel from a (Bt,N,N) block
    # with broadcasted_iota masks instead of materializing it in HBM.
    eye = jnp.eye(Bt, dtype=A.dtype)
    A_blk = jnp.einsum("gh,sgij->sgihj", eye, A.reshape(n_steps, Bt, N, N))
    A_blk = A_blk.reshape(n_steps * rows, rows).astype(jnp.bfloat16)

    # VMEM: double-buffer only the per-step-varying blocks; weights are held
    # once (Buffered(1)); add live-intermediate estimate and ~20% margin.
    bias_bytes = jnp.dtype(compute_dtype).itemsize
    varying = rows * F_in * 2 + rows * rows * 2 + Bt * OUT * 4
    invariant = (F_in * Cp * 2 + Cp * bias_bytes + L * Cp * Cp * 2
                 + L * Cp * bias_bytes + Cp * OUT * 2 + OUT * 4)
    live = 4 * rows * Cp * 4
    vmem_est = int(1.2 * (2 * varying + invariant + live))
    try:
        vmem_cap = int(pltpu.get_tpu_info().vmem_capacity_bytes)
    except Exception:
        vmem_cap = 64 << 20                       # v7x physical minimum
    vmem_cap = (vmem_cap * 3) // 4                # headroom for compiler scratch
    vmem_limit = min(vmem_est, vmem_cap) if vmem_est > (16 << 20) else None
    # TODO(synk): for very large C / L, stream the (L,Cp,Cp) weight stack over
    # a layer grid axis instead of holding it whole in VMEM.

    def _const_spec(shape):
        nd = len(shape)
        return pl.BlockSpec(shape, lambda b: (0,) * nd,
                            pipeline_mode=pl.Buffered(1))

    kernel = functools.partial(conv_regressor_kernel,
                               n_nodes=N, compute_dtype=compute_dtype)

    out = pl.pallas_call(
        kernel,
        out_shape=jax.ShapeDtypeStruct((B, OUT), jnp.float32),
        grid_spec=pltpu.PrefetchScalarGridSpec(
            num_scalar_prefetch=0,
            grid=(n_steps,),
            in_specs=[
                pl.BlockSpec((rows, F_in), lambda b: (b, 0)),   # x (flattened)
                pl.BlockSpec((rows, rows), lambda b: (b, 0)),   # block-diag A
                _const_spec((F_in, Cp)),                        # W_emb
                _const_spec((1, Cp)),                           # b_emb
                _const_spec((L, Cp, Cp)),                       # W layers
                _const_spec((L, 1, Cp)),                        # b layers
                _const_spec((Cp, OUT)),                         # W_fc
                _const_spec((1, OUT)),                          # b_fc
            ],
            out_specs=pl.BlockSpec((Bt, OUT), lambda b: (b, 0)),
        ),
        compiler_params=pltpu.CompilerParams(
            dimension_semantics=("parallel",),
            vmem_limit_bytes=vmem_limit,
        ),
    )(x2, A_blk, wemb, bemb, wl, bl, wfc, bfc)
    return out


def init_params(key, n_channel, n_conv_layer, in_feat=16, out_feat=1024):
    """Deterministic PyTorch-Linear-style init; weights stored transposed (in, out)."""
    def linear(key, fan_in, fan_out):
        k = 1.0 / jnp.sqrt(jnp.float32(fan_in))
        kw, kb = jax.random.split(key)
        w = jax.random.uniform(kw, (fan_in, fan_out), jnp.float32, -k, k)
        b = jax.random.uniform(kb, (1, fan_out), jnp.float32, -k, k)
        return w, b

    keys = jax.random.split(key, n_conv_layer + 2)
    wemb, bemb = linear(keys[0], in_feat, n_channel)
    wls, bls = [], []
    for i in range(n_conv_layer):
        w, b = linear(keys[1 + i], n_channel, n_channel)
        wls.append(w)
        bls.append(b)
    wfc, bfc = linear(keys[-1], n_channel, out_feat)
    return {
        "wemb": wemb, "bemb": bemb,
        "wl": jnp.stack(wls, 0),                       # (L, C, C)
        "bl": jnp.stack(bls, 0).reshape(n_conv_layer, 1, n_channel),
        "wfc": wfc, "bfc": bfc,
    }


def reference_forward(x, A, params):
    """Pure-JAX f32 mirror of the PyTorch forward, for correctness checking."""
    h = x @ params["wemb"] + params["bemb"]            # (B, N, C)
    L = params["wl"].shape[0]
    for l in range(L):
        h = h @ params["wl"][l] + params["bl"][l]
        h = jnp.einsum("bij,bjc->bic", A, h)
        h = jnp.maximum(h, 0.0)
    m = h.mean(axis=1)                                 # (B, C)
    out = m @ params["wfc"] + params["bfc"]            # (B, 1024)
    return jax.nn.sigmoid(out)


if __name__ == "__main__":
    # Small shapes consistent with the module: feature dim 16 is fixed by
    # Linear(16, n_channel); fc output 1024 is fixed by Linear(n_channel, 1024).
    B, N, F_in = 2, 8, 16
    n_channel, n_conv_layer = 32, 3

    key = jax.random.PRNGKey(0)
    kx, ka, kp = jax.random.split(key, 3)
    x = jax.random.normal(kx, (B, N, F_in), jnp.float32)
    A = jax.random.uniform(ka, (B, N, N), jnp.float32)

    params = init_params(kp, n_channel, n_conv_layer, in_feat=F_in, out_feat=1024)

    out = jax.block_until_ready(conv_regressor_forward(x, A, params))
    ref = jax.block_until_ready(reference_forward(x, A, params))

    assert out.shape == (B, 1024)
    # bf16 MXU operands / bf16 adjacency with f32 accumulation vs an all-f32
    # reference: tolerance loosened accordingly.
    assert jnp.allclose(out, ref, atol=3e-2, rtol=3e-2), "mismatch vs reference"

    print("KERNEL_OK")
</pallas_src>

<mosaic_0001>
module attributes {stable_mosaic.version = 11 : i64} {
  func.func @conv_regressor_kernel(%arg0: i32, %arg1: memref<16x16xbf16, #tpu.memory_space<vmem>>, %arg2: memref<16x16xbf16, #tpu.memory_space<vmem>>, %arg3: memref<16x128xbf16, #tpu.memory_space<vmem>>, %arg4: memref<1x128xf32, #tpu.memory_space<vmem>>, %arg5: memref<3x128x128xbf16, #tpu.memory_space<vmem>>, %arg6: memref<3x1x128xf32, #tpu.memory_space<vmem>>, %arg7: memref<128x1024xbf16, #tpu.memory_space<vmem>>, %arg8: memref<1x1024xf32, #tpu.memory_space<vmem>>, %arg9: memref<2x1024xf32, #tpu.memory_space<vmem>>) attributes {dimension_semantics = [#tpu.dimension_semantics<parallel>], iteration_bounds = array<i64: 1>, scalar_prefetch = 0 : i64, scratch_operands = 0 : i64, tpu.core_type = #tpu.core_type<tc>, window_params = [{transform_indices = @transform_0, window_bounds = array<i64: 16, 16>}, {transform_indices = @transform_1, window_bounds = array<i64: 16, 16>}, {pipeline_mode = #tpu.pipeline_mode<synchronous>, transform_indices = @transform_2, window_bounds = array<i64: 16, 128>}, {pipeline_mode = #tpu.pipeline_mode<synchronous>, transform_indices = @transform_3, window_bounds = array<i64: 1, 128>}, {pipeline_mode = #tpu.pipeline_mode<synchronous>, transform_indices = @transform_4, window_bounds = array<i64: 3, 128, 128>}, {pipeline_mode = #tpu.pipeline_mode<synchronous>, transform_indices = @transform_5, window_bounds = array<i64: 3, 1, 128>}, {pipeline_mode = #tpu.pipeline_mode<synchronous>, transform_indices = @transform_6, window_bounds = array<i64: 128, 1024>}, {pipeline_mode = #tpu.pipeline_mode<synchronous>, transform_indices = @transform_7, window_bounds = array<i64: 1, 1024>}, {transform_indices = @transform_8, window_bounds = array<i64: 2, 1024>}]} {
    %c0 = arith.constant 0 : index
    %c0_0 = arith.constant 0 : index
    %0 = vector.load %arg2[%c0, %c0_0] : memref<16x16xbf16, #tpu.memory_space<vmem>>, vector<16x16xbf16>
    %c0_1 = arith.constant 0 : index
    %c0_2 = arith.constant 0 : index
    %1 = vector.load %arg1[%c0_1, %c0_2] : memref<16x16xbf16, #tpu.memory_space<vmem>>, vector<16x16xbf16>
    %c0_3 = arith.constant 0 : index
    %c0_4 = arith.constant 0 : index
    %2 = vector.load %arg3[%c0_3, %c0_4] : memref<16x128xbf16, #tpu.memory_space<vmem>>, vector<16x128xbf16>
    %cst = arith.constant dense<0.000000e+00> : vector<16x128xf32>
    %3 = tpu.matmul %1, %2, %cst {dimension_numbers = #tpu.dot_dimension_numbers<[1], [0], [0], [1], [0, 0, 1, 1], [], []>} : vector<16x16xbf16>, vector<16x128xbf16>, vector<16x128xf32> -> vector<16x128xf32>
    %c0_5 = arith.constant 0 : index
    %c0_6 = arith.constant 0 : index
    %4 = vector.load %arg4[%c0_5, %c0_6] : memref<1x128xf32, #tpu.memory_space<vmem>>, vector<1x128xf32>
    %5 = vector.broadcast %4 : vector<1x128xf32> to vector<16x128xf32>
    %6 = arith.addf %3, %5 : vector<16x128xf32>
    %7 = arith.truncf %6 : vector<16x128xf32> to vector<16x128xbf16>
    %c0_7 = arith.constant 0 : index
    %c0_8 = arith.constant 0 : index
    %c0_9 = arith.constant 0 : index
    %8 = vector.load %arg5[%c0_7, %c0_8, %c0_9] : memref<3x128x128xbf16, #tpu.memory_space<vmem>>, vector<1x128x128xbf16>
    %9 = vector.shape_cast %8 : vector<1x128x128xbf16> to vector<128x128xbf16>
    %cst_10 = arith.constant dense<0.000000e+00> : vector<16x128xf32>
    %10 = tpu.matmul %7, %9, %cst_10 {dimension_numbers = #tpu.dot_dimension_numbers<[1], [0], [0], [1], [0, 0, 1, 1], [], []>} : vector<16x128xbf16>, vector<128x128xbf16>, vector<16x128xf32> -> vector<16x128xf32>
    %c0_11 = arith.constant 0 : index
    %c0_12 = arith.constant 0 : index
    %c0_13 = arith.constant 0 : index
    %11 = vector.load %arg6[%c0_11, %c0_12, %c0_13] : memref<3x1x128xf32, #tpu.memory_space<vmem>>, vector<1x1x128xf32>
    %12 = vector.shape_cast %11 : vector<1x1x128xf32> to vector<1x128xf32>
    %13 = vector.broadcast %12 : vector<1x128xf32> to vector<16x128xf32>
    %14 = arith.addf %10, %13 : vector<16x128xf32>
    %15 = arith.truncf %14 : vector<16x128xf32> to vector<16x128xbf16>
    %cst_14 = arith.constant dense<0.000000e+00> : vector<16x128xf32>
    %16 = tpu.matmul %0, %15, %cst_14 {dimension_numbers = #tpu.dot_dimension_numbers<[1], [0], [0], [1], [0, 0, 1, 1], [], []>} : vector<16x16xbf16>, vector<16x128xbf16>, vector<16x128xf32> -> vector<16x128xf32>
    %cst_15 = arith.constant 0.000000e+00 : f32
    %17 = vector.broadcast %cst_15 : f32 to vector<16x128xf32>
    %18 = arith.maximumf %16, %17 : vector<16x128xf32>
    %19 = arith.truncf %18 : vector<16x128xf32> to vector<16x128xbf16>
    %c1 = arith.constant 1 : index
    %c0_16 = arith.constant 0 : index
    %c0_17 = arith.constant 0 : index
    %20 = vector.load %arg5[%c1, %c0_16, %c0_17] : memref<3x128x128xbf16, #tpu.memory_space<vmem>>, vector<1x128x128xbf16>
    %21 = vector.shape_cast %20 : vector<1x128x128xbf16> to vector<128x128xbf16>
    %cst_18 = arith.constant dense<0.000000e+00> : vector<16x128xf32>
    %22 = tpu.matmul %19, %21, %cst_18 {dimension_numbers = #tpu.dot_dimension_numbers<[1], [0], [0], [1], [0, 0, 1, 1], [], []>} : vector<16x128xbf16>, vector<128x128xbf16>, vector<16x128xf32> -> vector<16x128xf32>
    %c1_19 = arith.constant 1 : index
    %c0_20 = arith.constant 0 : index
    %c0_21 = arith.constant 0 : index
    %23 = vector.load %arg6[%c1_19, %c0_20, %c0_21] : memref<3x1x128xf32, #tpu.memory_space<vmem>>, vector<1x1x128xf32>
    %24 = vector.shape_cast %23 : vector<1x1x128xf32> to vector<1x128xf32>
    %25 = vector.broadcast %24 : vector<1x128xf32> to vector<16x128xf32>
    %26 = arith.addf %22, %25 : vector<16x128xf32>
    %27 = arith.truncf %26 : vector<16x128xf32> to vector<16x128xbf16>
    %cst_22 = arith.constant dense<0.000000e+00> : vector<16x128xf32>
    %28 = tpu.matmul %0, %27, %cst_22 {dimension_numbers = #tpu.dot_dimension_numbers<[1], [0], [0], [1], [0, 0, 1, 1], [], []>} : vector<16x16xbf16>, vector<16x128xbf16>, vector<16x128xf32> -> vector<16x128xf32>
    %cst_23 = arith.constant 0.000000e+00 : f32
    %29 = vector.broadcast %cst_23 : f32 to vector<16x128xf32>
    %30 = arith.maximumf %28, %29 : vector<16x128xf32>
    %31 = arith.truncf %30 : vector<16x128xf32> to vector<16x128xbf16>
    %c2 = arith.constant 2 : index
    %c0_24 = arith.constant 0 : index
    %c0_25 = arith.constant 0 : index
    %32 = vector.load %arg5[%c2, %c0_24, %c0_25] : memref<3x128x128xbf16, #tpu.memory_space<vmem>>, vector<1x128x128xbf16>
    %33 = vector.shape_cast %32 : vector<1x128x128xbf16> to vector<128x128xbf16>
    %cst_26 = arith.constant dense<0.000000e+00> : vector<16x128xf32>
    %34 = tpu.matmul %31, %33, %cst_26 {dimension_numbers = #tpu.dot_dimension_numbers<[1], [0], [0], [1], [0, 0, 1, 1], [], []>} : vector<16x128xbf16>, vector<128x128xbf16>, vector<16x128xf32> -> vector<16x128xf32>
    %c2_27 = arith.constant 2 : index
    %c0_28 = arith.constant 0 : index
    %c0_29 = arith.constant 0 : index
    %35 = vector.load %arg6[%c2_27, %c0_28, %c0_29] : memref<3x1x128xf32, #tpu.memory_space<vmem>>, vector<1x1x128xf32>
    %36 = vector.shape_cast %35 : vector<1x1x128xf32> to vector<1x128xf32>
    %37 = vector.broadcast %36 : vector<1x128xf32> to vector<16x128xf32>
    %38 = arith.addf %34, %37 : vector<16x128xf32>
    %39 = arith.truncf %38 : vector<16x128xf32> to vector<16x128xbf16>
    %cst_30 = arith.constant dense<0.000000e+00> : vector<16x128xf32>
    %40 = tpu.matmul %0, %39, %cst_30 {dimension_numbers = #tpu.dot_dimension_numbers<[1], [0], [0], [1], [0, 0, 1, 1], [], []>} : vector<16x16xbf16>, vector<16x128xbf16>, vector<16x128xf32> -> vector<16x128xf32>
    %cst_31 = arith.constant 0.000000e+00 : f32
    %41 = vector.broadcast %cst_31 : f32 to vector<16x128xf32>
    %42 = arith.maximumf %40, %41 : vector<16x128xf32>
    %43 = vector.shape_cast %42 : vector<16x128xf32> to vector<2x8x128xf32>
    %cst_32 = arith.constant dense<0.000000e+00> : vector<2x128xf32>
    %44 = vector.multi_reduction <add>, %43, %cst_32 [1] : vector<2x8x128xf32> to vector<2x128xf32>
    %cst_33 = arith.constant 1.250000e-01 : f32
    %45 = vector.broadcast %cst_33 : f32 to vector<2x128xf32>
    %46 = arith.mulf %44, %45 : vector<2x128xf32>
    %47 = arith.truncf %46 : vector<2x128xf32> to vector<2x128xbf16>
    %c0_34 = arith.constant 0 : index
    %c0_35 = arith.constant 0 : index
    %48 = vector.load %arg7[%c0_34, %c0_35] : memref<128x1024xbf16, #tpu.memory_space<vmem>>, vector<128x1024xbf16>
    %cst_36 = arith.constant dense<0.000000e+00> : vector<2x1024xf32>
    %49 = tpu.matmul %47, %48, %cst_36 {dimension_numbers = #tpu.dot_dimension_numbers<[1], [0], [0], [1], [0, 0, 1, 1], [], []>} : vector<2x128xbf16>, vector<128x1024xbf16>, vector<2x1024xf32> -> vector<2x1024xf32>
    %c0_37 = arith.constant 0 : index
    %c0_38 = arith.constant 0 : index
    %50 = vector.load %arg8[%c0_37, %c0_38] : memref<1x1024xf32, #tpu.memory_space<vmem>>, vector<1x1024xf32>
    %51 = vector.broadcast %50 : vector<1x1024xf32> to vector<2x1024xf32>
    %52 = arith.addf %49, %51 : vector<2x1024xf32>
    %53 = arith.negf %52 : vector<2x1024xf32>
    %54 = math.exp %53 : vector<2x1024xf32>
    %cst_39 = arith.constant 1.000000e+00 : f32
    %55 = vector.broadcast %cst_39 : f32 to vector<2x1024xf32>
    %56 = arith.addf %55, %54 : vector<2x1024xf32>
    %57 = arith.divf %55, %56 : vector<2x1024xf32>
    %c0_40 = arith.constant 0 : index
    %c0_41 = arith.constant 0 : index
    %58 = vector.load %arg9[%c0_40, %c0_41] : memref<2x1024xf32, #tpu.memory_space<vmem>>, vector<2x1024xf32>
    tpu.vector_store %arg9[%c0_40, %c0_41], %57 {strides = array<i32>} : memref<2x1024xf32, #tpu.memory_space<vmem>>, vector<2x1024xf32>,
    return
  }
  func.func @transform_0(%arg0: i32) -> (i32, i32) {
    %c0_i32 = arith.constant 0 : i32
    %c0_i32_0 = arith.constant 0 : i32
    return %arg0, %c0_i32 : i32, i32
  }
  func.func @transform_1(%arg0: i32) -> (i32, i32) {
    %c0_i32 = arith.constant 0 : i32
    %c0_i32_0 = arith.constant 0 : i32
    return %arg0, %c0_i32 : i32, i32
  }
  func.func @transform_2(%arg0: i32) -> (i32, i32) {
    %c0_i32 = arith.constant 0 : i32
    %c0_i32_0 = arith.constant 0 : i32
    %c0_i32_1 = arith.constant 0 : i32
    return %c0_i32, %c0_i32_0 : i32, i32
  }
  func.func @transform_3(%arg0: i32) -> (i32, i32) {
    %c0_i32 = arith.constant 0 : i32
    %c0_i32_0 = arith.constant 0 : i32
    %c0_i32_1 = arith.constant 0 : i32
    return %c0_i32, %c0_i32_0 : i32, i32
  }
  func.func @transform_4(%arg0: i32) -> (i32, i32, i32) {
    %c0_i32 = arith.constant 0 : i32
    %c0_i32_0 = arith.constant 0 : i32
    %c0_i32_1 = arith.constant 0 : i32
    %c0_i32_2 = arith.constant 0 : i32
    return %c0_i32, %c0_i32_0, %c0_i32_1 : i32, i32, i32
  }
  func.func @transform_5(%arg0: i32) -> (i32, i32, i32) {
    %c0_i32 = arith.constant 0 : i32
    %c0_i32_0 = arith.constant 0 : i32
    %c0_i32_1 = arith.constant 0 : i32
    %c0_i32_2 = arith.constant 0 : i32
    return %c0_i32, %c0_i32_0, %c0_i32_1 : i32, i32, i32
  }
  func.func @transform_6(%arg0: i32) -> (i32, i32) {
    %c0_i32 = arith.constant 0 : i32
    %c0_i32_0 = arith.constant 0 : i32
    %c0_i32_1 = arith.constant 0 : i32
    return %c0_i32, %c0_i32_0 : i32, i32
  }
  func.func @transform_7(%arg0: i32) -> (i32, i32) {
    %c0_i32 = arith.constant 0 : i32
    %c0_i32_0 = arith.constant 0 : i32
    %c0_i32_1 = arith.constant 0 : i32
    return %c0_i32, %c0_i32_0 : i32, i32
  }
  func.func @transform_8(%arg0: i32) -> (i32, i32) {
    %c0_i32 = arith.constant 0 : i32
    %c0_i32_0 = arith.constant 0 : i32
    return %arg0, %c0_i32 : i32, i32
  }
}

</mosaic_0001>

<bundles_post_ra>
// kernel: tpu_custom_call.1
= control target key start
LH: loop header
LB: loop body
LE: loop exit
PB: predicated region body
PF: predicated region fallthrough
CT: control target
= control target key end

     0   :  { %13 = vsyncpa [#allocation3], 0  ;;  %s1966_s0 = inlined_call_operand.hbm [shape: bf16[16,16], index: 0, kind: input, shape index: {}]   ;;  %s1967_s1 = inlined_call_operand.hbm [shape: bf16[16,16], index: 1, kind: input, shape index: {}]   ;;  %s1968_s2 = inlined_call_operand.hbm [shape: bf16[16,128], index: 2, kind: input, shape index: {}]   ;;  %s1969_s3 = inlined_call_operand.vmem [shape: f32[1,128], index: 3, kind: input, shape index: {}]   ;;  %s1970_s4 = inlined_call_operand.hbm [shape: bf16[3,128,128], index: 4, kind: input, shape index: {}]   ;;  %s1971_s5 = inlined_call_operand.vmem [shape: f32[3,1,128], index: 5, kind: input, shape index: {}]   ;;  %s1972_s6 = inlined_call_operand.hbm [shape: bf16[128,1024], index: 6, kind: input, shape index: {}]   ;;  %s1973_s7 = inlined_call_operand.vmem [shape: f32[1,1024], index: 7, kind: input, shape index: {}]   ;;  %s1974_s8 = inlined_call_operand.hbm [shape: f32[2,1024], index: 8, kind: output, shape index: {}]  }
   0x1   :  { %14 = vsyncpa [#allocation6], 0 }
   0x2   :  { %15 = vsyncpa [#allocation9], 0 }
   0x3   :  { %16 = vsyncpa [#allocation4], 0  ;;  %s1805_s27 = smov [#allocation5]   ;;  %s1806_s29 = smov [#allocation8]  }
   0x4   :  { %s34_s28 = sshll.u32 %s1805_s27, 4  ;;  %s60_s30 = sshll.u32 %s1806_s29, 4  ;;  %s35_s28 = int_to_ptr.vmem [resolvable:$true] %s34_s28  ;;  %s61_s30 = int_to_ptr.vmem [resolvable:$true] %s60_s30 }
   0x5   :  { %s1685_s9 = scalar_lea.vmem %s35_s28, 128  ;;  %p1690_p1 = scmp.lt.s32.totalorder %s35_s28, %s35_s28 }
   0x6   :  { %p1686_p0 = scmp.ne.s32.totalorder %s35_s28, %s1685_s9  ;;  %p1691_p2 = scmp.lt.s32.totalorder %s1685_s9, %s1685_s9 }
   0x8   :  { %p1692_p3 = por %p1691_p2, %p1690_p1 }
   0xa   :  { %p1693_p4 = pnand %p1692_p3, %p1686_p0 }
   0xc   :  { %1696 = shalt.err (!%p1693_p4)
}
   0xd   :  { %s1807_s10 = smov 64   ;;  %s1808_s11 = smov 4  }
   0xe   :  { %40 = dma.hbm_to_vmem [thread:$0]  %s1967_s1, 128, %s35_s28, [#allocation6], %s1807_s10, %s1807_s10, %s1808_s11  }
   0xf   :  { %s1705_s14 = scalar_lea.vmem %s61_s30, 3072  ;;  %p1710_p6 = scmp.lt.s32.totalorder %s61_s30, %s61_s30 }
  0x10   :  { %p1706_p5 = scmp.ne.s32.totalorder %s61_s30, %s1705_s14  ;;  %p1711_p7 = scmp.lt.s32.totalorder %s1705_s14, %s1705_s14 }
  0x12   :  { %p1712_p8 = por %p1711_p7, %p1710_p6 }
  0x14   :  { %p1713_p9 = pnand %p1712_p8, %p1706_p5 }
  0x16   :  { %1716 = shalt.err (!%p1713_p9)
}
  0x17   :  { %66 = dma.hbm_to_vmem [thread:$0]  %s1970_s4, 3072, %s61_s30, [#allocation9], %s1807_s10, %s1807_s10, %s1808_s11  }
  0x18   :  { %s1809_s17 = smov [#allocation2]   ;;  %s1810_s19 = smov [#allocation7]  }
  0x19   :  { %s22_s18 = sshll.u32 %s1809_s17, 4  ;;  %s46_s20 = sshll.u32 %s1810_s19, 4  ;;  %s23_s18 = int_to_ptr.vmem [resolvable:$true] %s22_s18  ;;  %s47_s20 = int_to_ptr.vmem [resolvable:$true] %s46_s20 }
  0x1a   :  { %s1725_s1 = scalar_lea.vmem %s23_s18, 128  ;;  %p1730_p11 = scmp.lt.s32.totalorder %s23_s18, %s23_s18 }
  0x1b   :  { %p1726_p10 = scmp.ne.s32.totalorder %s23_s18, %s1725_s1  ;;  %p1731_p12 = scmp.lt.s32.totalorder %s1725_s1, %s1725_s1 }
  0x1d   :  { %p1732_p13 = por %p1731_p12, %p1730_p11 }
  0x1f   :  { %p1733_p0 = pnand %p1732_p13, %p1726_p10 }
  0x21   :  { %1736 = shalt.err (!%p1733_p0)
}
  0x22   :  { %28 = dma.hbm_to_vmem [thread:$0]  %s1966_s0, 128, %s23_s18, [#allocation3], %s1807_s10, %s1807_s10, %s1808_s11  }
  0x23   :  { %s1745_s4 = scalar_lea.vmem %s47_s20, 128  ;;  %p1750_p2 = scmp.lt.s32.totalorder %s47_s20, %s47_s20 }
  0x24   :  { %p1746_p1 = scmp.ne.s32.totalorder %s47_s20, %s1745_s4  ;;  %p1751_p3 = scmp.lt.s32.totalorder %s1745_s4, %s1745_s4 }
  0x26   :  { %p1752_p4 = por %p1751_p3, %p1750_p2 }
  0x28   :  { %p1753_p5 = pnand %p1752_p4, %p1746_p1 }
  0x2a   :  { %1756 = shalt.err (!%p1753_p5)
}
  0x2b   :  { %52 = dma.hbm_to_vmem [thread:$0]  %s1968_s2, 128, %s47_s20, [#allocation6], %s1807_s10, %s1807_s10, %s1808_s11  }
  0x2c   :  { %s1811_s25 = smov [#allocation10]  }
  0x2d   :  { %s74_s26 = sshll.u32 %s1811_s25, 4  ;;  %s75_s26 = int_to_ptr.vmem [resolvable:$true] %s74_s26 }
  0x2e   :  { %s1765_s27 = scalar_lea.vmem %s75_s26, 8192  ;;  %p1770_p7 = scmp.lt.s32.totalorder %s75_s26, %s75_s26 }
  0x2f   :  { %p1766_p6 = scmp.ne.s32.totalorder %s75_s26, %s1765_s27  ;;  %p1771_p8 = scmp.lt.s32.totalorder %s1765_s27, %s1765_s27 }
  0x31   :  { %p1772_p9 = por %p1771_p8, %p1770_p7 }
  0x33   :  { %p1773_p10 = pnand %p1772_p9, %p1766_p6 }
  0x35   :  { %1776 = shalt.err (!%p1773_p10)
}
  0x36   :  { %s1812_s0 = smov 512   ;;  %s1813_s28 = smov 32  }
  0x37   :  { %80 = dma.hbm_to_vmem [thread:$0]  %s1972_s6, 8192, %s75_s26, [#allocation9], %s1812_s0, %s1812_s0, %s1813_s28  }
  0x38   :  { %1797 = dma.done.wait [#allocation3], 128  }
  0x39   :  { %1798 = vsyncadd [#allocation3], 4294967168 }
  0x3a   :  { %1799 = dma.done.wait [#allocation6], 256  }
  0x3b   :  { %1800 = vsyncadd [#allocation6], 4294967040 }
  0x3c   :  { %1801 = dma.done.wait [#allocation9], 11264  }
  0x3d   :  { %1802 = vsyncadd [#allocation9], 4294956032  ;;  %v1814_v0 = vmov 0.0   ;;  %vm1815_vm0 = vmmov 0   ;;  %v1618_v1 = vld [vmem:[#allocation7] sm:$0xff]   ;;  %v1619_v2 = vld [vmem:[#allocation2] sm:$0xff]  }
  0x3e   :  { %1520 = vmatprep.subr.bf16.mxu0 %v1814_v0  ;;  %1522 = vmatprep.mubr.msk.bf16.mxu0 %vm1815_vm0, %v1814_v0  ;;  %vm123_vm1 = vcmask 130048   ;;  %v1620_v3 = vld [vmem:[#allocation8 + $0x38] sm:$0xff]   ;;  %v1621_v4 = vld [vmem:[#allocation8 + $0x30] sm:$0xff]   ;;  %v1622_v5 = vld [vmem:[#allocation8 + $0x28] sm:$0xff]   ;;  %vm777_vm2 = vcmask 1041409  }
  0x3f   :  { %1526 = vmatprep.subr.bf16.mxu1 %v1814_v0  ;;  %1542 = vmatprep.mubr.msk.bf16.mxu1 %vm1815_vm0, %v1814_v0  ;;  %v1623_v6 = vld [vmem:[#allocation8 + $0x20] sm:$0xff]   ;;  %v1624_v7 = vld [vmem:[#allocation8 + $0x18] sm:$0xff]   ;;  %v1625_v8 = vld [vmem:[#allocation8 + $0x10] sm:$0xff]  }
  0x40   :  { %1521 = vmatpush3.bf16.msra.mxu0 %v1618_v1  ;;  %1527 = vmatpush3.bf16.msra.mxu1 %v1620_v3  ;;  %v1626_v9 = vld [vmem:[#allocation8 + $0x8] sm:$0xff]   ;;  %v1627_v10 = vld [vmem:[#allocation8] sm:$0xff]   ;;  %v1917_v27 = vld [vmem:[#allocation5] sm:$0xff]  }
  0x41   :  { %1546 = vmatprep.subr.bf16.mxu0 %v1814_v0  ;;  %1528 = vmatprep.subr.bf16.mxu1 %v1814_v0  ;;  %v1376_v12 = vld [vmem:[%s1969_s3] ss:$0 sm:$0xff]  ;;  %v1629_v28 = vld [vmem:[#allocation8 + $0x78] sm:$0xff]   ;;  %v1630_v29 = vld [vmem:[#allocation8 + $0x70] sm:$0xff]  }
  0x42   :  { %v1380_v20 = vld [vmem:[%s1971_s5] ss:$0 sm:$0xff]  ;;  %v1632_v31 = vld [vmem:[#allocation8 + $0x60] sm:$0xff]   ;;  %v1633_v32 = vld [vmem:[#allocation8 + $0x58] sm:$0xff]  }
  0x43   :  { %1523 = vmatmul.mubr.msk.bf16.vlgmr.msra.gmra.mxu0 %vm123_vm1, %v1619_v2  ;;  %v1631_v30 = vld [vmem:[#allocation8 + $0x68] sm:$0xff]   ;;  %v1634_v33 = vld [vmem:[#allocation8 + $0x50] sm:$0xff]   ;;  %v1636_v35 = vld [vmem:[#allocation8 + $0x40] sm:$0xff]  }
  0x44   :  { %1548 = vmatprep.mubr.msk.bf16.mxu0 %vm1815_vm0, %v1814_v0  ;;  %1529 = vmatpush3.bf16.msra.mxu1 %v1621_v4  ;;  %v1635_v34 = vld [vmem:[#allocation8 + $0x48] sm:$0xff]   ;;  %v1637_v43 = vld [vmem:[#allocation8 + $0xb8] sm:$0xff]   ;;  %v1638_v44 = vld [vmem:[#allocation8 + $0xb0] sm:$0xff]  }
  0x45   :  { %1530 = vmatprep.subr.bf16.mxu1 %v1814_v0  ;;  %v1639_v45 = vld [vmem:[#allocation8 + $0xa8] sm:$0xff]   ;;  %v1640_v46 = vld [vmem:[#allocation8 + $0xa0] sm:$0xff]   ;;  %v1641_v47 = vld [vmem:[#allocation8 + $0x98] sm:$0xff]  }
  0x46   :  { %v1642_v48 = vld [vmem:[#allocation8 + $0x90] sm:$0xff]   ;;  %v1392_v50 = vld [vmem:[%s1971_s5 + $0x1] ss:$0 sm:$0xff]  ;;  %v1644_v58 = vld [vmem:[#allocation8 + $0x80] sm:$0xff]  }
  0x47   :  { %v1643_v57 = vld [vmem:[#allocation8 + $0x88] sm:$0xff]  }
  0x48   :  { %1531 = vmatpush3.bf16.msra.mxu1 %v1622_v5  ;;  %v724_v3 = vld [vmem:[#allocation10 + $0x1c8] sm:$0xff] }
  0x49   :  { %1532 = vmatprep.subr.bf16.mxu1 %v1814_v0  ;;  %v728_v4 = vld [vmem:[#allocation10 + $0x1e8] sm:$0xff] }
  0x4a   :  { %v1471_v5 = vcombine.low %v724_v3, %v728_v4 }
  0x4c   :  { %1533 = vmatpush3.bf16.msra.mxu1 %v1623_v6  ;;  %v1472_v6 = vcombine.high %v724_v3, %v728_v4  ;;  %v667_v3 = vld [vmem:[#allocation10] sm:$0xff] }
  0x4d   :  { %1534 = vmatprep.subr.bf16.mxu1 %v1814_v0  ;;  %v671_v4 = vld [vmem:[#allocation10 + $0x20] sm:$0xff] }
  0x50   :  { %1535 = vmatpush3.bf16.msra.mxu1 %v1624_v7  ;;  %v716_v7 = vld [vmem:[#allocation10 + $0x188] sm:$0xff] }
  0x51   :  { %1536 = vmatprep.subr.bf16.mxu1 %v1814_v0 }
  0x54   :  { %1537 = vmatpush3.bf16.msra.mxu1 %v1625_v8  ;;  %v720_v8 = vld [vmem:[#allocation10 + $0x1a8] sm:$0xff] }
  0x55   :  { %1538 = vmatprep.subr.bf16.mxu1 %v1814_v0 }
  0x58   :  { %1539 = vmatpush3.bf16.msra.mxu1 %v1626_v9  ;;  %v1464_v9 = vcombine.high %v716_v7, %v720_v8 }
  0x59   :  { %1540 = vmatprep.subr.bf16.mxu1 %v1814_v0 }
  0x5c   :  { %1541 = vmatpush3.bf16.msra.mxu1 %v1627_v10 }
  0x5d   :  { %1578 = vmatprep.subr.bf16.mxu1 %v1814_v0 }
 0x103   :  { %v161_v11 = vpop.f32.mrf.mxu0 }
 0x104   :  { %v162_v15 = vadd.f32 %v1376_v12, %v161_v11  ;;  %v1403_v11 = vld [vmem:[%s1971_s5 + $0x2] ss:$0 sm:$0xff] }
 0x105   :  { %v1524_v13 = vpop.f32.mrf.mxu0 }
 0x106   :  { %v723_v13 = vld [vmem:[#allocation10 + $0x1c0] sm:$0xff] }
 0x107   :  { %v164_v14 = vpop.f32.mrf.mxu0 }
 0x108   :  { %v165_v16 = vadd.f32 %v1376_v12, %v164_v14  ;;  %v727_v14 = vld [vmem:[#allocation10 + $0x1e0] sm:$0xff] }
 0x109   :  { %v1525_v17 = vpop.f32.mrf.mxu0 }
 0x10a   :  { %v168_v18 = vpack.c.bf16 %v165_v16, %v162_v15 }
 0x10c   :  { %1543 = vmatmul.mubr.bf16.vlgmr.msra.gmra.mxu1 %v168_v18 }
 0x10d   :  { %1594 = vmatprep.mubr.msk.bf16.mxu1 %vm1815_vm0, %v1814_v0  ;;  %1579 = vmatpush3.bf16.msra.mxu1 %v1637_v43  ;;  %v695_v43 = vld [vmem:[#allocation10 + $0xe0] sm:$0xff] }
 0x10e   :  { %1580 = vmatprep.subr.bf16.mxu1 %v1814_v0 }
 0x111   :  { %1581 = vmatpush3.bf16.msra.mxu1 %v1638_v44  ;;  %v692_v44 = vld [vmem:[#allocation10 + $0xc8] sm:$0xff] }
 0x112   :  { %1582 = vmatprep.subr.bf16.mxu1 %v1814_v0 }
 0x115   :  { %1583 = vmatpush3.bf16.msra.mxu1 %v1639_v45 }
 0x116   :  { %1584 = vmatprep.subr.bf16.mxu1 %v1814_v0 }
 0x119   :  { %1585 = vmatpush3.bf16.msra.mxu1 %v1640_v46  ;;  %v696_v46 = vld [vmem:[#allocation10 + $0xe8] sm:$0xff] }
 0x11a   :  { %1586 = vmatprep.subr.bf16.mxu1 %v1814_v0 }
 0x11d   :  { %1587 = vmatpush3.bf16.msra.mxu1 %v1641_v47 }
 0x11e   :  { %1588 = vmatprep.subr.bf16.mxu1 %v1814_v0 }
 0x121   :  { %1589 = vmatpush3.bf16.msra.mxu1 %v1642_v48  ;;  %v1439_v48 = vcombine.low %v692_v44, %v696_v46 }
 0x122   :  { %1590 = vmatprep.subr.bf16.mxu1 %v1814_v0 }
 0x125   :  { %1591 = vmatpush3.bf16.msra.mxu1 %v1643_v57 }
 0x126   :  { %1592 = vmatprep.subr.bf16.mxu1 %v1814_v0 }
 0x129   :  { %1593 = vmatpush3.bf16.msra.mxu1 %v1644_v58  ;;  %v675_v58 = vld [vmem:[#allocation10 + $0x40] sm:$0xff] }
 0x12a   :  { %1142 = vmatprep.subr.bf16.mxu1 %v1472_v6  ;;  %v1414_v6 = vcombine.high %v667_v3, %v671_v4 }
 0x1cc   :  { %v274_v19 = vpop.f32.mrf.mxu1 }
 0x1cd   :  { %v275_v23 = vadd.f32 %v1380_v20, %v274_v19  ;;  %v1470_v19 = vcombine.high %v723_v13, %v727_v14 }
 0x1ce   :  { %v1544_v21 = vpop.f32.mrf.mxu1 }
 0x1cf   :  { %v715_v21 = vld [vmem:[#allocation10 + $0x180] sm:$0xff] }
 0x1d0   :  { %v277_v22 = vpop.f32.mrf.mxu1 }
 0x1d1   :  { %v278_v24 = vadd.f32 %v1380_v20, %v277_v22  ;;  %v719_v22 = vld [vmem:[#allocation10 + $0x1a0] sm:$0xff] }
 0x1d2   :  { %v1545_v25 = vpop.f32.mrf.mxu1 }
 0x1d3   :  { %v281_v26 = vpack.c.bf16 %v278_v24, %v275_v23  ;;  %v1469_v23 = vcombine.low %v723_v13, %v727_v14  ;;  %v1462_v24 = vcombine.high %v715_v21, %v719_v22  ;;  %v1461_v25 = vcombine.low %v715_v21, %v719_v22 }
 0x1d5   :  { %1547 = vmatpush3.bf16.msra.mxu0 %v281_v26  ;;  %v707_v26 = vld [vmem:[#allocation10 + $0x140] sm:$0xff] }
 0x1d6   :  { %1552 = vmatprep.subr.bf16.mxu0 %v1814_v0 }
 0x1d8   :  { %1549 = vmatmul.mubr.msk.bf16.vlgmr.msra.gmra.mxu0 %vm123_vm1, %v1917_v27 }
 0x1d9   :  { %1553 = vmatpush3.bf16.msra.mxu0 %v1629_v28  ;;  %1568 = vmatprep.mubr.msk.bf16.mxu0 %vm1815_vm0, %v1814_v0  ;;  %v711_v28 = vld [vmem:[#allocation10 + $0x160] sm:$0xff] }
 0x1da   :  { %1554 = vmatprep.subr.bf16.mxu0 %v1814_v0 }
 0x1dd   :  { %1555 = vmatpush3.bf16.msra.mxu0 %v1630_v29  ;;  %v708_v29 = vld [vmem:[#allocation10 + $0x148] sm:$0xff] }
 0x1de   :  { %1556 = vmatprep.subr.bf16.mxu0 %v1814_v0 }
 0x1e1   :  { %1557 = vmatpush3.bf16.msra.mxu0 %v1631_v30  ;;  %v1454_v30 = vcombine.high %v707_v26, %v711_v28 }
 0x1e2   :  { %1558 = vmatprep.subr.bf16.mxu0 %v1814_v0 }
 0x1e5   :  { %1559 = vmatpush3.bf16.msra.mxu0 %v1632_v31  ;;  %v712_v31 = vld [vmem:[#allocation10 + $0x168] sm:$0xff] }
 0x1e6   :  { %1560 = vmatprep.subr.bf16.mxu0 %v1814_v0 }
 0x1e9   :  { %1561 = vmatpush3.bf16.msra.mxu0 %v1633_v32  ;;  %v1453_v32 = vcombine.low %v707_v26, %v711_v28 }
 0x1ea   :  { %1562 = vmatprep.subr.bf16.mxu0 %v1814_v0 }
 0x1ed   :  { %1563 = vmatpush3.bf16.msra.mxu0 %v1634_v33  ;;  %v1455_v33 = vcombine.low %v708_v29, %v712_v31 }
 0x1ee   :  { %1564 = vmatprep.subr.bf16.mxu0 %v1814_v0 }
 0x1f1   :  { %1565 = vmatpush3.bf16.msra.mxu0 %v1635_v34  ;;  %v1456_v34 = vcombine.high %v708_v29, %v712_v31 }
 0x1f2   :  { %1566 = vmatprep.subr.bf16.mxu0 %v1814_v0 }
 0x1f5   :  { %1567 = vmatpush3.bf16.msra.mxu0 %v1636_v35  ;;  %v699_v35 = vld [vmem:[#allocation10 + $0x100] sm:$0xff] }
 0x1f6   :  { %1572 = vmatprep.subr.bf16.mxu0 %v1814_v0 }
 0x298   :  { %v324_v36 = vpop.f32.mrf.mxu0 }
 0x299   :  { %v331_v39 = vmax.f32 %v324_v36, 0.0  ;;  %v703_v36 = vld [vmem:[#allocation10 + $0x120] sm:$0xff] }
 0x29a   :  { %v1550_v37 = vpop.f32.mrf.mxu0 }
 0x29b   :  { %v700_v37 = vld [vmem:[#allocation10 + $0x108] sm:$0xff] }
 0x29c   :  { %v327_v38 = vpop.f32.mrf.mxu0 }
 0x29d   :  { %v332_v40 = vmax.f32 %v327_v38, 0.0  ;;  %v704_v38 = vld [vmem:[#allocation10 + $0x128] sm:$0xff] }
 0x29e   :  { %v1551_v41 = vpop.f32.mrf.mxu0 }
 0x29f   :  { %v333_v42 = vpack.c.bf16 %v332_v40, %v331_v39  ;;  %v1445_v39 = vcombine.low %v699_v35, %v703_v36  ;;  %v1447_v40 = vcombine.low %v700_v37, %v704_v38  ;;  %v1448_v41 = vcombine.high %v700_v37, %v704_v38 }
 0x2a1   :  { %1569 = vmatmul.mubr.bf16.vlgmr.msra.gmra.mxu0 %v333_v42  ;;  %v691_v42 = vld [vmem:[#allocation10 + $0xc0] sm:$0xff] }
 0x2a2   :  { %1574 = vmatprep.mubr.msk.bf16.mxu0 %vm1815_vm0, %v1814_v0  ;;  %v1438_v45 = vcombine.high %v691_v42, %v695_v43  ;;  %v1437_v47 = vcombine.low %v691_v42, %v695_v43 }
 0x361   :  { %v441_v49 = vpop.f32.mrf.mxu0 }
 0x362   :  { %v442_v53 = vadd.f32 %v1392_v50, %v441_v49  ;;  %v1440_v49 = vcombine.high %v692_v44, %v696_v46  ;;  %v721_v44 = vld [vmem:[#allocation10 + $0x1b0] sm:$0xff]  ;;  %v722_v46 = vld [vmem:[#allocation10 + $0x1b8] sm:$0xff] }
 0x363   :  { %v1570_v51 = vpop.f32.mrf.mxu0 }
 0x364   :  { %v687_v51 = vld [vmem:[#allocation10 + $0xa0] sm:$0xff] }
 0x365   :  { %v444_v52 = vpop.f32.mrf.mxu0 }
 0x366   :  { %v445_v54 = vadd.f32 %v1392_v50, %v444_v52  ;;  %v683_v50 = vld [vmem:[#allocation10 + $0x80] sm:$0xff]  ;;  %v684_v52 = vld [vmem:[#allocation10 + $0x88] sm:$0xff] }
 0x367   :  { %v1571_v55 = vpop.f32.mrf.mxu0 }
 0x368   :  { %v448_v56 = vpack.c.bf16 %v445_v54, %v442_v53  ;;  %v1430_v53 = vcombine.high %v683_v50, %v687_v51  ;;  %v688_v54 = vld [vmem:[#allocation10 + $0xa8] sm:$0xff]  ;;  %v1429_v55 = vcombine.low %v683_v50, %v687_v51  ;;  %v709_v51 = vld [vmem:[#allocation10 + $0x150] sm:$0xff] }
 0x369   :  { %v1432_v57 = vcombine.high %v684_v52, %v688_v54 }
 0x36a   :  { %1573 = vmatpush3.bf16.msra.mxu0 %v448_v56  ;;  %v1431_v56 = vcombine.low %v684_v52, %v688_v54  ;;  %v713_v52 = vld [vmem:[#allocation10 + $0x170] sm:$0xff]  ;;  %v714_v54 = vld [vmem:[#allocation10 + $0x178] sm:$0xff] }
 0x36b   :  { %1598 = vmatprep.subr.bf16.mxu0 %v1814_v0 }
 0x36d   :  { %1575 = vmatmul.mubr.msk.bf16.vlgmr.msra.gmra.mxu0 %vm123_vm1, %v1917_v27 }
 0x36e   :  { %1600 = vmatprep.mubr.msk.bf16.mxu0 %vm1815_vm0, %v1814_v0  ;;  %v1463_v0 = vcombine.low %v716_v7, %v720_v8  ;;  %v672_v7 = vld [vmem:[#allocation10 + $0x28] sm:$0xff]  ;;  %v1413_v8 = vcombine.low %v667_v3, %v671_v4  ;;  %v693_v4 = vld [vmem:[#allocation10 + $0xd0] sm:$0xff] }
 0x42d   :  { %v483_v59 = vpop.f32.mrf.mxu0 }
 0x42e   :  { %v490_v62 = vmax.f32 %v483_v59, 0.0  ;;  %v679_v59 = vld [vmem:[#allocation10 + $0x60] sm:$0xff] }
 0x42f   :  { %v1576_v60 = vpop.f32.mrf.mxu0 }
 0x430   :  { %v676_v60 = vld [vmem:[#allocation10 + $0x48] sm:$0xff] }
 0x431   :  { %v486_v61 = vpop.f32.mrf.mxu0 }
 0x432   :  { %v491_v63 = vmax.f32 %v486_v61, 0.0  ;;  %v1422_v61 = vcombine.high %v675_v58, %v679_v59 }
 0x433   :  { %v1577_v1 = vpop.f32.mrf.mxu0 }
 0x434   :  { %v492_v2 = vpack.c.bf16 %v491_v63, %v490_v62  ;;  %v680_v62 = vld [vmem:[#allocation10 + $0x68] sm:$0xff]  ;;  %v1421_v63 = vcombine.low %v675_v58, %v679_v59  ;;  %v701_v59 = vld [vmem:[#allocation10 + $0x110] sm:$0xff] }
 0x435   :  { %v1423_v1 = vcombine.low %v676_v60, %v680_v62 }
 0x436   :  { %1595 = vmatmul.mubr.bf16.vlgmr.msra.gmra.mxu1 %v492_v2  ;;  %v1424_v2 = vcombine.high %v676_v60, %v680_v62  ;;  %v705_v60 = vld [vmem:[#allocation10 + $0x130] sm:$0xff]  ;;  %v706_v62 = vld [vmem:[#allocation10 + $0x138] sm:$0xff] }
 0x437   :  { %1143 = vmatpush1.bf16.msra.mxu1 %v1471_v5  ;;  %v668_v5 = vld [vmem:[#allocation10 + $0x8] sm:$0xff] }
 0x438   :  { %1144 = vmatprep.subr.bf16.mxu1 %v1464_v9  ;;  %v1415_v9 = vcombine.low %v668_v5, %v672_v7 }
 0x43b   :  { %1145 = vmatpush1.bf16.msra.mxu1 %v1463_v0  ;;  %v1416_v0 = vcombine.high %v668_v5, %v672_v7  ;;  %v697_v5 = vld [vmem:[#allocation10 + $0xf0] sm:$0xff]  ;;  %v698_v7 = vld [vmem:[#allocation10 + $0xf8] sm:$0xff] }
 0x43c   :  { %1146 = vmatprep.subr.bf16.mxu1 %v1456_v34 }
 0x43f   :  { %1147 = vmatpush1.bf16.msra.mxu1 %v1455_v33 }
 0x440   :  { %1148 = vmatprep.subr.bf16.mxu1 %v1448_v41  ;;  %v717_v41 = vld [vmem:[#allocation10 + $0x190] sm:$0xff] }
 0x443   :  { %1149 = vmatpush1.bf16.msra.mxu1 %v1447_v40 }
 0x444   :  { %1150 = vmatprep.subr.bf16.mxu1 %v1440_v49  ;;  %v1466_v49 = vcombine.high %v717_v41, %v721_v44 }
 0x447   :  { %1151 = vmatpush1.bf16.msra.mxu1 %v1439_v48 }
 0x448   :  { %1152 = vmatprep.subr.bf16.mxu1 %v1432_v57  ;;  %v1458_v57 = vcombine.high %v709_v51, %v713_v52 }
 0x44b   :  { %1153 = vmatpush1.bf16.msra.mxu1 %v1431_v56 }
 0x44c   :  { %1154 = vmatprep.subr.bf16.mxu1 %v1424_v2  ;;  %v1450_v2 = vcombine.high %v701_v59, %v705_v60 }
 0x44f   :  { %1155 = vmatpush1.bf16.msra.mxu1 %v1423_v1 }
 0x450   :  { %1156 = vmatprep.subr.bf16.mxu1 %v1416_v0  ;;  %v1442_v0 = vcombine.high %v693_v4, %v697_v5 }
 0x453   :  { %1157 = vmatpush1.bf16.msra.mxu1 %v1415_v9 }
 0x4f6   :  { %v600_v10 = vpop.f32.mrf.mxu1 }
 0x4f7   :  { %v601_v16 = vadd.f32 %v1403_v11, %v600_v10  ;;  %v725_v10 = vld [vmem:[#allocation10 + $0x1d0] sm:$0xff] }
 0x4f8   :  { %v1596_v12 = vpop.f32.mrf.mxu1 }
 0x4f9   :  { %v726_v12 = vld [vmem:[#allocation10 + $0x1d8] sm:$0xff] }
 0x4fa   :  { %v603_v15 = vpop.f32.mrf.mxu1 }
 0x4fb   :  { %v604_v17 = vadd.f32 %v1403_v11, %v603_v15  ;;  %v729_v11 = vld [vmem:[#allocation10 + $0x1f0] sm:$0xff]  ;;  %v730_v15 = vld [vmem:[#allocation10 + $0x1f8] sm:$0xff] }
 0x4fc   :  { %v1597_v18 = vpop.f32.mrf.mxu1  ;;  %v1473_v13 = vcombine.low %v725_v10, %v729_v11  ;;  %v1474_v14 = vcombine.high %v725_v10, %v729_v11  ;;  %v685_v11 = vld [vmem:[#allocation10 + $0x90] sm:$0xff] }
 0x4fd   :  { %v607_v20 = vpack.c.bf16 %v604_v17, %v601_v16  ;;  %v1816_v16 = vmov 0   ;;  %v1475_v17 = vcombine.low %v726_v12, %v730_v15  ;;  %v1476_v18 = vcombine.high %v726_v12, %v730_v15  ;;  %v689_v12 = vld [vmem:[#allocation10 + $0xb0] sm:$0xff] }
 0x4fe   :  { %1174 = vmatprep.mubr.bf16.mxu1 %v1816_v16  ;;  %v1441_v15 = vcombine.low %v693_v4, %v697_v5 }
 0x4ff   :  { %1599 = vmatpush3.bf16.msra.mxu0 %v607_v20  ;;  %1224 = vmatprep.subr.bf16.mxu1 %v1476_v18 }
 0x500   :  { %1101 = vmatprep.subr.bf16.mxu0 %v1470_v19 }
 0x502   :  { %1601 = vmatmul.mubr.msk.bf16.vlgmr.msra.gmra.mxu0 %vm123_vm1, %v1917_v27  ;;  %v1446_v27 = vcombine.high %v699_v35, %v703_v36 }
 0x503   :  { %1102 = vmatpush1.bf16.msra.mxu0 %v1469_v23  ;;  %1133 = vmatprep.mubr.bf16.mxu0 %v1816_v16 }
 0x504   :  { %1103 = vmatprep.subr.bf16.mxu0 %v1462_v24 }
 0x507   :  { %1104 = vmatpush1.bf16.msra.mxu0 %v1461_v25 }
 0x508   :  { %1105 = vmatprep.subr.bf16.mxu0 %v1454_v30 }
 0x50b   :  { %1106 = vmatpush1.bf16.msra.mxu0 %v1453_v32 }
 0x50c   :  { %1107 = vmatprep.subr.bf16.mxu0 %v1446_v27 }
 0x50f   :  { %1108 = vmatpush1.bf16.msra.mxu0 %v1445_v39 }
 0x510   :  { %1109 = vmatprep.subr.bf16.mxu0 %v1438_v45  ;;  %v718_v45 = vld [vmem:[#allocation10 + $0x198] sm:$0xff] }
 0x511   :  { %v1468_v50 = vcombine.high %v718_v45, %v722_v46  ;;  %v1467_v56 = vcombine.low %v718_v45, %v722_v46 }
 0x513   :  { %1110 = vmatpush1.bf16.msra.mxu0 %v1437_v47 }
 0x514   :  { %1111 = vmatprep.subr.bf16.mxu0 %v1430_v53  ;;  %v710_v53 = vld [vmem:[#allocation10 + $0x158] sm:$0xff] }
 0x515   :  { %v1460_v58 = vcombine.high %v710_v53, %v714_v54  ;;  %v1459_v1 = vcombine.low %v710_v53, %v714_v54 }
 0x517   :  { %1112 = vmatpush1.bf16.msra.mxu0 %v1429_v55  ;;  %v1465_v55 = vcombine.low %v717_v41, %v721_v44  ;;  %v731_v41 = vld [vmem:[%s1973_s7] sm:$0xff]  ;;  %s1818_s7 = smov [#allocation11]  }
 0x518   :  { %1113 = vmatprep.subr.bf16.mxu0 %v1422_v61  ;;  %v702_v61 = vld [vmem:[#allocation10 + $0x118] sm:$0xff]  ;;  %s1365_s15 = sshll.u32 %s1818_s7, 4  ;;  %s1366_s15 = int_to_ptr.vmem [resolvable:$true] %s1365_s15 }
 0x519   :  { %v1452_v3 = vcombine.high %v702_v61, %v706_v62  ;;  %v1451_v9 = vcombine.low %v702_v61, %v706_v62  ;;  %s1777_s16 = scalar_lea.vmem %s1366_s15, 256  ;;  %p1782_p12 = scmp.lt.s32.totalorder %s1366_s15, %s1366_s15 }
 0x51a   :  { %p1778_p11 = scmp.ne.s32.totalorder %s1366_s15, %s1777_s16  ;;  %p1783_p13 = scmp.lt.s32.totalorder %s1777_s16, %s1777_s16 }
 0x51b   :  { %1114 = vmatpush1.bf16.msra.mxu0 %v1421_v63  ;;  %v1457_v63 = vcombine.low %v709_v51, %v713_v52 }
 0x51c   :  { %1115 = vmatprep.subr.bf16.mxu0 %v1414_v6  ;;  %v694_v6 = vld [vmem:[#allocation10 + $0xd8] sm:$0xff]  ;;  %p1784_p0 = por %p1783_p13, %p1782_p12 }
 0x51d   :  { %v1444_v10 = vcombine.high %v694_v6, %v698_v7 }
 0x51e   :  { %p1785_p1 = pnand %p1784_p0, %p1778_p11 }
 0x51f   :  { %1116 = vmatpush1.bf16.msra.mxu0 %v1413_v8  ;;  %v1449_v8 = vcombine.low %v701_v59, %v705_v60 }
 0x520   :  { %1183 = vmatprep.subr.bf16.mxu0 %v1474_v14  ;;  %v690_v14 = vld [vmem:[#allocation10 + $0xb8] sm:$0xff] }
 0x5c2   :  { %v642_v19 = vpop.f32.mrf.mxu0 }
 0x5c3   :  { %v649_v20 = vmax.f32 %v642_v19, 0.0  ;;  %v677_v19 = vld [vmem:[#allocation10 + $0x50] sm:$0xff] }
 0x5c4   :  { %v1602_v21 = vpop.f32.mrf.mxu0 }
 0x5c5   :  { %v651_v22 = vrot.slane %v649_v20, 4  ;;  %v678_v21 = vld [vmem:[#allocation10 + $0x58] sm:$0xff] }
 0x5c6   :  { %v645_v23 = vpop.f32.mrf.mxu0 }
 0x5c7   :  { %v652_v24 = vadd.f32 %v651_v22, %v649_v20  ;;  %v650_v25 = vmax.f32 %v645_v23, 0.0  ;;  %v681_v20 = vld [vmem:[#allocation10 + $0x70] sm:$0xff]  ;;  %v682_v22 = vld [vmem:[#allocation10 + $0x78] sm:$0xff]  ;;  %v1433_v23 = vcombine.low %v685_v11, %v689_v12 }
 0x5c8   :  { %v1603_v26 = vpop.f32.mrf.mxu0 }
 0x5c9   :  { %v653_v28 = vrot.slane %v652_v24, 2  ;;  %v657_v29 = vrot.slane %v650_v25, 4  ;;  %v1428_v26 = vcombine.high %v678_v21, %v682_v22 }
 0x5cb   :  { %v654_v30 = vadd.f32 %v653_v28, %v652_v24  ;;  %v658_v31 = vadd.f32 %v657_v29, %v650_v25  ;;  %v1426_v25 = vcombine.high %v677_v19, %v681_v20  ;;  %v669_v28 = vld [vmem:[#allocation10 + $0x10] sm:$0xff] }
 0x5cc   :  { %v673_v29 = vld [vmem:[#allocation10 + $0x30] sm:$0xff] }
 0x5cd   :  { %v655_v32 = vrot.slane %v654_v30, 1  ;;  %v659_v33 = vrot.slane %v658_v31, 2 }
 0x5cf   :  { %v656_v34 = vadd.f32 %v655_v32, %v654_v30  ;;  %v660_v35 = vadd.f32 %v659_v33, %v658_v31  ;;  %v670_v30 = vld [vmem:[#allocation10 + $0x18] sm:$0xff]  ;;  %v1425_v32 = vcombine.low %v677_v19, %v681_v20  ;;  %v1427_v33 = vcombine.low %v678_v21, %v682_v22 }
 0x5d0   :  { %v674_v31 = vld [vmem:[#allocation10 + $0x38] sm:$0xff] }
 0x5d1   :  { %v663_v36 = vmul.f32 0.125, %v656_v34  ;;  %v661_v37 = vrot.slane %v660_v35, 1  ;;  %v1418_v34 = vcombine.high %v669_v28, %v673_v29 }
 0x5d3   :  { %v662_v27 = vadd.f32 %v661_v37, %v660_v35  ;;  %v665_v38 = vpack.c.bf16 %v663_v36, %v663_v36  ;;  %v1420_v35 = vcombine.high %v670_v30, %v674_v31  ;;  %v1417_v36 = vcombine.low %v669_v28, %v673_v29 }
 0x5d4   :  { %v1419_v37 = vcombine.low %v670_v30, %v674_v31 }
 0x5d5   :  { %v664_v39 = vmul.f32 0.125, %v662_v27  ;;  %v775_v42 = vunpack.c.l.b16 %v665_v38  ;;  %v733_v27 = vlaneseq }
 0x5d7   :  { %v666_v40 = vpack.c.bf16 %v664_v39, %v664_v39  ;;  %v734_v38 = vshrl.u32 %v733_v27, 7 }
 0x5d9   :  { %v776_v43 = vunpack.c.l.b16 %v666_v40  ;;  %v735_v39 = vsub.s32 0, %v734_v38  ;;  %v743_v40 = vsub.s32 2, %v734_v38 }
 0x5db   :  { %v778_v47 = vsel %vm777_vm2, %v776_v43, %v775_v42  ;;  %v739_v42 = vsub.s32 1, %v734_v38  ;;  %v747_v43 = vsub.s32 3, %v734_v38  ;;  %v736_v44 = vrot.slane %v731_v41, %v735_v39 }
 0x5dc   :  { %v1954_v48 = vpack.c.b16 %v778_v47, %v778_v47  ;;  %v744_v45 = vrot.slane %v731_v41, %v743_v40 }
 0x5dd   :  { %v740_v46 = vrot.slane %v731_v41, %v739_v42  ;;  %v748_v47 = vrot.slane %v731_v41, %v747_v43 }
 0x5de   :  { %1134 = vmatmul.mubr.bf16.vlgmr.msra.gmra.mxu0 %v1954_v48  ;;  %1175 = vmatmul.mubr.bf16.vlgmr.msra.gmra.mxu1 %v1954_v48 }
 0x5df   :  { %1184 = vmatpush1.bf16.msra.mxu0 %v1473_v13  ;;  %1225 = vmatpush1.bf16.msra.mxu1 %v1475_v17  ;;  %v686_v13 = vld [vmem:[#allocation10 + $0x98] sm:$0xff]  ;;  %v1434_v17 = vcombine.high %v685_v11, %v689_v12  ;;  %v755_v12 = vsub.s32 5, %v734_v38 }
 0x5e0   :  { %1185 = vmatprep.subr.bf16.mxu0 %v1466_v49  ;;  %1226 = vmatprep.subr.bf16.mxu1 %v1468_v50  ;;  %v1436_v18 = vcombine.high %v686_v13, %v690_v14  ;;  %v1435_v24 = vcombine.low %v686_v13, %v690_v14  ;;  %v763_v13 = vsub.s32 7, %v734_v38 }
 0x5e1   :  { %1215 = vmatprep.mubr.bf16.mxu0 %v1816_v16  ;;  %1256 = vmatprep.mubr.bf16.mxu1 %v1816_v16  ;;  %v1443_v16 = vcombine.low %v694_v6, %v698_v7 }
 0x5e3   :  { %1186 = vmatpush1.bf16.msra.mxu0 %v1465_v55  ;;  %1227 = vmatpush1.bf16.msra.mxu1 %v1467_v56 }
 0x5e4   :  { %1187 = vmatprep.subr.bf16.mxu0 %v1458_v57  ;;  %1228 = vmatprep.subr.bf16.mxu1 %v1460_v58 }
 0x5e7   :  { %1188 = vmatpush1.bf16.msra.mxu0 %v1457_v63  ;;  %1229 = vmatpush1.bf16.msra.mxu1 %v1459_v1 }
 0x5e8   :  { %1189 = vmatprep.subr.bf16.mxu0 %v1450_v2  ;;  %1230 = vmatprep.subr.bf16.mxu1 %v1452_v3 }
 0x5eb   :  { %1190 = vmatpush1.bf16.msra.mxu0 %v1449_v8  ;;  %1231 = vmatpush1.bf16.msra.mxu1 %v1451_v9  ;;  %v751_v9 = vsub.s32 4, %v734_v38 }
 0x5ec   :  { %1191 = vmatprep.subr.bf16.mxu0 %v1442_v0  ;;  %1232 = vmatprep.subr.bf16.mxu1 %v1444_v10  ;;  %v759_v0 = vsub.s32 6, %v734_v38  ;;  %v1817_v10 = vmov 1983009808  }
 0x5ed   :  { %v1324_v11 = vunpack.c.l.s4 %v1817_v10  ;;  %v752_v14 = vrot.slane %v731_v41, %v751_v9 }
 0x5ef   :  { %1192 = vmatpush1.bf16.msra.mxu0 %v1441_v15  ;;  %1233 = vmatpush1.bf16.msra.mxu1 %v1443_v16  ;;  %v760_v15 = vrot.slane %v731_v41, %v759_v0  ;;  %v1325_v16 = vunpack.c.0.s8 %v1324_v11 }
 0x5f0   :  { %1193 = vmatprep.subr.bf16.mxu0 %v1434_v17  ;;  %1234 = vmatprep.subr.bf16.mxu1 %v1436_v18  ;;  %v756_v17 = vrot.slane %v731_v41, %v755_v12  ;;  %v764_v18 = vrot.slane %v731_v41, %v763_v13 }
 0x5f3   :  { %1194 = vmatpush1.bf16.msra.mxu0 %v1433_v23  ;;  %1235 = vmatpush1.bf16.msra.mxu1 %v1435_v24 }
 0x5f4   :  { %1195 = vmatprep.subr.bf16.mxu0 %v1426_v25  ;;  %1236 = vmatprep.subr.bf16.mxu1 %v1428_v26  ;;  %v1328_v26 = vsub.s32 %v1325_v16, %v734_v38 }
 0x5f7   :  { %1196 = vmatpush1.bf16.msra.mxu0 %v1425_v32  ;;  %1237 = vmatpush1.bf16.msra.mxu1 %v1427_v33 }
 0x5f8   :  { %1197 = vmatprep.subr.bf16.mxu0 %v1418_v34  ;;  %1238 = vmatprep.subr.bf16.mxu1 %v1420_v35 }
 0x5fb   :  { %1198 = vmatpush1.bf16.msra.mxu0 %v1417_v36  ;;  %1239 = vmatpush1.bf16.msra.mxu1 %v1419_v37 }
 0x5fe   :  { %1216 = vmatmul.mubr.bf16.vlgmr.msra.gmra.mxu0 %v1954_v48  ;;  %1257 = vmatmul.mubr.bf16.vlgmr.msra.gmra.mxu1 %v1954_v48 }
 0x69e   :  { %v1135_v49 = vpop.f32.mrf.mxu0  ;;  %v1176_v50 = vpop.f32.mrf.mxu1 }
 0x69f   :  { %v1136_v51 = vadd.f32 %v1135_v49, %v736_v44  ;;  %v1177_v52 = vadd.f32 %v1176_v50, %v744_v45 }
 0x6a0   :  { %v1137_v53 = vpop.f32.mrf.mxu0  ;;  %v1178_v48 = vpop.f32.mrf.mxu1 }
 0x6a1   :  { %v1477_v54 = vmul.f32 -1.442695, %v1136_v51  ;;  %v1479_v55 = vmul.f32 -1.442695, %v1177_v52  ;;  %v1138_v56 = vadd.f32 %v1137_v53, %v740_v46  ;;  %v1179_v57 = vadd.f32 %v1178_v48, %v748_v47 }
 0x6a2   :  { %v1139_v58 = vpop.f32.mrf.mxu0  ;;  %v1180_v59 = vpop.f32.mrf.mxu1 }
 0x6a3   :  { %1645 = vpow2.f32 %v1477_v54  ;;  %v1478_v60 = vmul.f32 -1.442695, %v1138_v56  ;;  %v1480_v61 = vmul.f32 -1.442695, %v1179_v57 }
 0x6a4   :  { %1647 = vpow2.f32 %v1479_v55  ;;  %v1140_v62 = vpop.f32.mrf.mxu0  ;;  %v1181_v63 = vpop.f32.mrf.mxu1 }
 0x6a5   :  { %1649 = vpow2.f32 %v1478_v60 }
 0x6a6   :  { %1651 = vpow2.f32 %v1480_v61 }
 0x6b0   :  { %v1646_v1 = vpop.eup %1645 }
 0x6b1   :  { %v1648_v2 = vpop.eup %1647  ;;  %v1289_v3 = vadd.f32 1.0, %v1646_v1 }
 0x6b2   :  { %v1650_v4 = vpop.eup %1649  ;;  %v1291_v5 = vadd.f32 1.0, %v1648_v2 }
 0x6b3   :  { %v1652_v6 = vpop.eup %1651  ;;  %1653 = vrcp.f32 %v1289_v3  ;;  %v1290_v7 = vadd.f32 1.0, %v1650_v4 }
 0x6b4   :  { %1655 = vrcp.f32 %v1291_v5  ;;  %v1292_v8 = vadd.f32 1.0, %v1652_v6 }
 0x6b5   :  { %1657 = vrcp.f32 %v1290_v7 }
 0x6b6   :  { %1659 = vrcp.f32 %v1292_v8 }
 0x6be   :  { %v1217_v19 = vpop.f32.mrf.mxu0  ;;  %v1258_v20 = vpop.f32.mrf.mxu1 }
 0x6bf   :  { %v1218_v21 = vadd.f32 %v1217_v19, %v752_v14  ;;  %v1259_v22 = vadd.f32 %v1258_v20, %v760_v15 }
 0x6c0   :  { %v1654_v23 = vpop.eup %1653  ;;  %v1219_v24 = vpop.f32.mrf.mxu0 }
 0x6c1   :  { %v1260_v25 = vpop.f32.mrf.mxu1  ;;  %v1656_v28 = vpop.eup %1655  ;;  %v1481_v29 = vmul.f32 -1.442695, %v1218_v21  ;;  %v1483_v30 = vmul.f32 -1.442695, %v1259_v22  ;;  %v1220_v31 = vadd.f32 %v1219_v24, %v756_v17 }
 0x6c2   :  { %v1261_v32 = vadd.f32 %v1260_v25, %v764_v18  ;;  %v1658_v33 = vpop.eup %1657  ;;  %v1221_v34 = vpop.f32.mrf.mxu0 }
 0x6c3   :  { %v1262_v35 = vpop.f32.mrf.mxu1  ;;  %v1660_v36 = vpop.eup %1659  ;;  %1661 = vpow2.f32 %v1481_v29  ;;  %v1482_v37 = vmul.f32 -1.442695, %v1220_v31  ;;  %v1321_v39 = vcombine.low %v1654_v23, %v1658_v33 }
 0x6c4   :  { %v1484_v27 = vmul.f32 -1.442695, %v1261_v32  ;;  %1663 = vpow2.f32 %v1483_v30  ;;  %v1222_v40 = vpop.f32.mrf.mxu0  ;;  %v1322_v42 = vcombine.low %v1656_v28, %v1660_v36 }
 0x6c5   :  { %v1263_v41 = vpop.f32.mrf.mxu1  ;;  %1665 = vpow2.f32 %v1482_v37  ;;  %v1329_v43 = vrot.slane %v1321_v39, %v1328_v26 }
 0x6c6   :  { %1667 = vpow2.f32 %v1484_v27  ;;  %v1336_v38 = vrot.slane %v1322_v42, %v1328_v26 }
 0x6c8   :  { %v1337_v44 = vcombine.low %v1329_v43, %v1336_v38 }
 0x6ca   :  { %1357 = vst [vmem:[#allocation11] sm:$0xff] %v1337_v44 }
 0x6d0   :  { %v1662_v45 = vpop.eup %1661 }
 0x6d1   :  { %v1664_v46 = vpop.eup %1663  ;;  %v1293_v47 = vadd.f32 1.0, %v1662_v45 }
 0x6d2   :  { %v1666_v49 = vpop.eup %1665  ;;  %v1295_v50 = vadd.f32 1.0, %v1664_v46 }
 0x6d3   :  { %v1668_v51 = vpop.eup %1667  ;;  %1669 = vrcp.f32 %v1293_v47  ;;  %v1294_v52 = vadd.f32 1.0, %v1666_v49 }
 0x6d4   :  { %1671 = vrcp.f32 %v1295_v50  ;;  %v1296_v53 = vadd.f32 1.0, %v1668_v51 }
 0x6d5   :  { %1673 = vrcp.f32 %v1294_v52 }
 0x6d6   :  { %1675 = vrcp.f32 %v1296_v53 }
 0x6e0   :  { %v1670_v48 = vpop.eup %1669 }
 0x6e1   :  { %v1672_v54 = vpop.eup %1671 }
 0x6e2   :  { %v1674_v55 = vpop.eup %1673 }
 0x6e3   :  { %v1676_v56 = vpop.eup %1675  ;;  %v1338_v57 = vcombine.low %v1670_v48, %v1674_v55 }
 0x6e4   :  { %v1339_v58 = vcombine.low %v1672_v54, %v1676_v56 }
 0x6e5   :  { %v1346_v59 = vrot.slane %v1338_v57, %v1328_v26 }
 0x6e6   :  { %v1353_v60 = vrot.slane %v1339_v58, %v1328_v26 }
 0x6e8   :  { %v1354_v61 = vcombine.low %v1346_v59, %v1353_v60 }
 0x6ea   :  { %1358 = vst [vmem:[#allocation11 + $0x8] sm:$0xff] %v1354_v61 }
 0x6eb   :  { %1788 = shalt.err (!%p1785_p1)
}
 0x6ec   :  { %1368 = dma.vmem_to_hbm [thread:$0]  %s1366_s15, 256, %s1974_s8, [#allocation4]  }
 0x6ed   :  { %1803 = dma.done.wait [#allocation4], 256  }
 0x6ee   :  { %1804 = vsyncadd [#allocation4], 4294967040 }
 0x6ef   :  { %1372 = vsyncpa [#allocation3], 1 }
 0x6f0   :  { %1373 = vsyncpa [#allocation6], 1 }
 0x6f1   :  { %1374 = vsyncpa [#allocation9], 1 }
 0x6f2   :  { %1375 = vsyncpa [#allocation4], 1 }

</bundles_post_ra>
